<compile_context>
chip_gen: v7x
topology: tpu7x:2x2x1
jax: 0.10.0
libtpu: 0.0.40
codegen_flags: <defaults>
</compile_context>

<pallas_src>
import jax
import jax.numpy as jnp
from jax.experimental import pallas as pl
from jax.experimental.pallas import tpu as pltpu


def _make_film_preprocess_kernel(num_channels, scale, bias, out_dtype):
    """Kernel closure: o = u8_to_f32(x) * scale[row % C] + bias[row % C]."""
    scale = [float(s) for s in scale]
    bias = [float(v) for v in bias]

    def kernel(x_ref, o_ref):
        tr = x_ref.shape[0]
        # Global row index of every row in this tile, shaped (TR, 1).
        rows = pl.program_id(0) * tr + jax.lax.broadcasted_iota(
            jnp.int32, (tr, 1), 0)
        ch = rows % num_channels
        # Per-row affine coefficients built from compile-time constants
        # (VPU-only, (TR, 1) shaped -- negligible next to the data tile).
        a = jnp.full((tr, 1), scale[num_channels - 1], dtype=jnp.float32)
        b = jnp.full((tr, 1), bias[num_channels - 1], dtype=jnp.float32)
        for c in range(num_channels - 1):
            sel = ch == c
            a = jnp.where(sel, jnp.float32(scale[c]), a)
            b = jnp.where(sel, jnp.float32(bias[c]), b)
        x = x_ref[...].astype(jnp.float32)
        o_ref[...] = (x * a + b).astype(out_dtype)

    return kernel


def _choose_tile_rows(num_rows, hw, out_bytes):
    """Pick TR so double-buffered (u8 in + out) tiles fit v7x scoped VMEM."""
    budget = 12 * 1024 * 1024              # leave headroom under 32 MiB scoped
    per_row = 2 * (1 + out_bytes) * hw     # double-buffered bytes per row
    cap = max(1, budget // per_row)
    if cap >= num_rows:
        return num_rows                    # single block (full-dim exception)
    tr = min(cap, 2048)
    if tr >= 32:
        tr = (tr // 32) * 32               # dense uint8 sublane packing
    else:
        tr = max(8, (tr // 8) * 8)         # at least dense f32 sublanes
    return min(tr, num_rows)


def _preprocess_one_view(view_u8, mean, std, out_dtype=jnp.float32):
    """uint8 (B, T, C, H, W) -> out_dtype (B, T, C, H, W), normalized."""
    B, T, C, H, W = view_u8.shape
    HW = H * W
    R = B * T * C

    # Fold `x/255` and Normalize into one affine per channel.
    scale = [1.0 / (255.0 * float(s)) for s in std]
    bias = [-float(m) / float(s) for m, s in zip(mean, std)]

    x2 = view_u8.reshape(R, HW)            # free reshape of NCHW memory
    out_bytes = jnp.dtype(out_dtype).itemsize
    tr = _choose_tile_rows(R, HW, out_bytes)
    grid = (pl.cdiv(R, tr),)

    kernel = _make_film_preprocess_kernel(C, scale, bias, out_dtype)

    cost = pl.CostEstimate(
        flops=2 * R * HW,                  # one mul + one add per element
        transcendentals=0,
        bytes_accessed=R * HW * (1 + out_bytes),
    )

    out = pl.pallas_call(
        kernel,
        out_shape=jax.ShapeDtypeStruct((R, HW), out_dtype),
        grid=grid,
        in_specs=[pl.BlockSpec((tr, HW), lambda i: (i, 0))],
        out_specs=pl.BlockSpec((tr, HW), lambda i: (i, 0)),
        compiler_params=pltpu.CompilerParams(
            dimension_semantics=("parallel",)),
        cost_estimate=cost,
    )(x2)
    return out.reshape(B, T, C, H, W)


class ImageFilmEfficientEncoder:
    """JAX/Pallas port of the PyTorch module's concrete forward logic."""

    def __init__(self, obs_dim, vision_obs_horizon, views, output_dim,
                 channels_last=True, resize_obs_dim=None, use_normalize=True,
                 out_dtype=jnp.float32):
        self.obs_dim = obs_dim
        self.vision_obs_horizon = vision_obs_horizon
        self.views = views
        self.output_dim = output_dim
        self.channels_last = channels_last
        # Deterministic "Normalize" transform parameters (standard ImageNet
        # stats), kept as Python floats so they constant-fold into the kernel.
        self.use_normalize = use_normalize
        self.norm_mean = [0.485, 0.456, 0.406]
        self.norm_std = [0.229, 0.224, 0.225]
        # out_dtype=jnp.bfloat16 halves output HBM traffic (semantics change
        # vs the float32 PyTorch module -- only use if downstream allows).
        self.out_dtype = out_dtype

    def forward(self, views, task_desc_emb):
        view = views[self.views[0]]
        assert view.dtype == jnp.uint8, (
            "Casted before reaching vision encoder, inefficient PCIe bandwidth usage!")
        batch_size, obs_horizon, channels, height, width = view.shape
        assert height == self.obs_dim[0] and width == self.obs_dim[1]
        assert obs_horizon == self.vision_obs_horizon

        processed_views = {}
        for view_name, v in views.items():
            if self.use_normalize:
                processed_views[view_name] = _preprocess_one_view(
                    v,
                    self.norm_mean[:channels],
                    self.norm_std[:channels],
                    out_dtype=self.out_dtype,
                )
            else:
                # transforms == []: forward just reshapes and passes through.
                processed_views[view_name] = v.reshape(
                    batch_size, obs_horizon, channels, height, width)

        # TODO(synk): `process_views(views=..., context=task_desc_emb)` is abstract
        # in ImageFilmEfficientEncoder (no concrete subclass given), so we return
        # the processed views dict instead of an encoded feature.
        return processed_views


if __name__ == "__main__":
    key = jax.random.PRNGKey(0)
    B, T, C, H, W = 2, 2, 3, 16, 16
    OUTPUT_DIM = 32

    enc = ImageFilmEfficientEncoder(
        obs_dim=(H, W), vision_obs_horizon=T, views=["front"],
        output_dim=OUTPUT_DIM)

    k_img, k_emb = jax.random.split(key)
    img = jax.random.randint(
        k_img, (B, T, C, H, W), 0, 256, dtype=jnp.int32).astype(jnp.uint8)
    task_desc_emb = jax.random.normal(k_emb, (B, OUTPUT_DIM), jnp.float32)

    out = enc.forward({"front": img}, task_desc_emb)
    result = jax.block_until_ready(out["front"])

    # Reference check (pure JAX) of the normalize pipeline.
    mean = jnp.array(enc.norm_mean, jnp.float32).reshape(1, 1, C, 1, 1)
    std = jnp.array(enc.norm_std, jnp.float32).reshape(1, 1, C, 1, 1)
    ref = (img.astype(jnp.float32) / 255.0 - mean) / std
    assert result.shape == (B, T, C, H, W)
    assert result.dtype == jnp.float32
    assert jnp.max(jnp.abs(result - ref)) < 1e-5

    print("KERNEL_OK")
</pallas_src>

<mosaic_0001>
module attributes {stable_mosaic.version = 11 : i64} {
  func.func @kernel(%arg0: i32, %arg1: memref<12x256xi8, #tpu.memory_space<vmem>>, %arg2: memref<12x256xf32, #tpu.memory_space<vmem>>) attributes {dimension_semantics = [#tpu.dimension_semantics<parallel>], iteration_bounds = array<i64: 1>, scalar_prefetch = 0 : i64, scratch_operands = 0 : i64, tpu.core_type = #tpu.core_type<tc>, window_params = [{transform_indices = @transform_0, window_bounds = array<i64: 12, 256>}, {transform_indices = @transform_1, window_bounds = array<i64: 12, 256>}]} {
    %c12_i32 = arith.constant 12 : i32
    %0 = arith.muli %arg0, %c12_i32 : i32
    %1 = tpu.iota {dimensions = array<i32: 0>} : vector<12x1xi32>
    %2 = vector.broadcast %0 : i32 to vector<12x1xi32>
    %3 = arith.addi %2, %1 : vector<12x1xi32>
    %c3_i32 = arith.constant 3 : i32
    %c0_i32 = arith.constant 0 : i32
    %4 = arith.cmpi eq, %c3_i32, %c0_i32 : i32
    %c1_i32 = arith.constant 1 : i32
    %5 = arith.select %4, %c1_i32, %c3_i32 : i32
    %6 = vector.broadcast %5 : i32 to vector<12x1xi32>
    %7 = arith.remsi %3, %6 : vector<12x1xi32>
    %c0_i32_0 = arith.constant 0 : i32
    %8 = vector.broadcast %c0_i32_0 : i32 to vector<12x1xi32>
    %9 = arith.cmpi ne, %7, %8 : vector<12x1xi32>
    %c0_i32_1 = arith.constant 0 : i32
    %10 = vector.broadcast %c0_i32_1 : i32 to vector<12x1xi32>
    %11 = arith.cmpi slt, %7, %10 : vector<12x1xi32>
    %c0_i32_2 = arith.constant 0 : i32
    %12 = arith.cmpi slt, %5, %c0_i32_2 : i32
    %13 = vector.broadcast %12 : i1 to vector<12x1xi1>
    %14 = vector.broadcast %13 : vector<12x1xi1> to vector<12x1xi1>
    %15 = arith.xori %11, %14 : vector<12x1xi1>
    %16 = arith.andi %15, %9 : vector<12x1xi1>
    %17 = vector.broadcast %5 : i32 to vector<12x1xi32>
    %18 = arith.addi %7, %17 : vector<12x1xi32>
    %19 = arith.select %16, %18, %7 : vector<12x1xi1>, vector<12x1xi32>
    %cst = arith.constant 0.0174291935 : f32
    %20 = vector.broadcast %cst : f32 to vector<12x1xf32>
    %cst_3 = arith.constant -1.80444443 : f32
    %21 = vector.broadcast %cst_3 : f32 to vector<12x1xf32>
    %c0_i32_4 = arith.constant 0 : i32
    %22 = vector.broadcast %c0_i32_4 : i32 to vector<12x1xi32>
    %23 = arith.cmpi eq, %19, %22 : vector<12x1xi32>
    %cst_5 = arith.constant 0.0171247534 : f32
    %24 = vector.broadcast %cst_5 : f32 to vector<12x1xf32>
    %25 = arith.select %23, %24, %20 : vector<12x1xi1>, vector<12x1xf32>
    %cst_6 = arith.constant -2.11790395 : f32
    %26 = vector.broadcast %cst_6 : f32 to vector<12x1xf32>
    %27 = arith.select %23, %26, %21 : vector<12x1xi1>, vector<12x1xf32>
    %c1_i32_7 = arith.constant 1 : i32
    %28 = vector.broadcast %c1_i32_7 : i32 to vector<12x1xi32>
    %29 = arith.cmpi eq, %19, %28 : vector<12x1xi32>
    %cst_8 = arith.constant 0.0175070036 : f32
    %30 = vector.broadcast %cst_8 : f32 to vector<12x1xf32>
    %31 = arith.select %29, %30, %25 : vector<12x1xi1>, vector<12x1xf32>
    %cst_9 = arith.constant -2.03571439 : f32
    %32 = vector.broadcast %cst_9 : f32 to vector<12x1xf32>
    %33 = arith.select %29, %32, %27 : vector<12x1xi1>, vector<12x1xf32>
    %c0 = arith.constant 0 : index
    %c0_10 = arith.constant 0 : index
    %34 = vector.load %arg1[%c0, %c0_10] : memref<12x256xi8, #tpu.memory_space<vmem>>, vector<12x256xi8>
    %35 = arith.uitofp %34 : vector<12x256xi8> to vector<12x256xf32>
    %36 = vector.broadcast %31 : vector<12x1xf32> to vector<12x256xf32>
    %37 = arith.mulf %35, %36 : vector<12x256xf32>
    %38 = vector.broadcast %33 : vector<12x1xf32> to vector<12x256xf32>
    %39 = arith.addf %37, %38 : vector<12x256xf32>
    %c0_11 = arith.constant 0 : index
    %c0_12 = arith.constant 0 : index
    %40 = vector.load %arg2[%c0_11, %c0_12] : memref<12x256xf32, #tpu.memory_space<vmem>>, vector<12x256xf32>
    tpu.vector_store %arg2[%c0_11, %c0_12], %39 {strides = array<i32>} : memref<12x256xf32, #tpu.memory_space<vmem>>, vector<12x256xf32>,
    return
  }
  func.func @transform_0(%arg0: i32) -> (i32, i32) {
    %c0_i32 = arith.constant 0 : i32
    %c0_i32_0 = arith.constant 0 : i32
    return %arg0, %c0_i32 : i32, i32
  }
  func.func @transform_1(%arg0: i32) -> (i32, i32) {
    %c0_i32 = arith.constant 0 : i32
    %c0_i32_0 = arith.constant 0 : i32
    return %arg0, %c0_i32 : i32, i32
  }
}

</mosaic_0001>

<bundles_post_ra>
// kernel: tpu_custom_call.1
= control target key start
LH: loop header
LB: loop body
LE: loop exit
PB: predicated region body
PF: predicated region fallthrough
CT: control target
= control target key end

     0   :  { %6 = vsyncpa [#allocation3], 0  ;;  %s227_s0 = inlined_call_operand.hbm [shape: u8[12,256], index: 0, kind: input, shape index: {}]   ;;  %s228_s1 = inlined_call_operand.hbm [shape: f32[12,256], index: 1, kind: output, shape index: {}]  }
   0x1   :  { %7 = vsyncpa [#allocation4], 0  ;;  %s177_s6 = smov [#allocation2]   ;;  %s129_s10 = scalar_lea.hbm %s227_s0, 128 }
   0x2   :  { %s13_s7 = sshll.u32 %s177_s6, 4  ;;  %p130_p0 = scmp.ne.s32.totalorder %s227_s0, %s129_s10  ;;  %s14_s7 = int_to_ptr.vmem [resolvable:$true] %s13_s7 }
   0x3   :  { %p133_p1 = scmp.lt.u32.totalorder %s129_s10, %s227_s0 }
   0x5   :  { %p135_p2 = pnand %p133_p1, %p130_p0 }
   0x7   :  { %138 = shalt.err (!%p135_p2)
}
   0x8   :  { %s139_s15 = scalar_lea.vmem %s14_s7, 128  ;;  %p144_p4 = scmp.lt.s32.totalorder %s14_s7, %s14_s7 }
   0x9   :  { %p140_p3 = scmp.ne.s32.totalorder %s14_s7, %s139_s15  ;;  %p145_p5 = scmp.lt.s32.totalorder %s139_s15, %s139_s15 }
   0xb   :  { %p146_p6 = por %p145_p5, %p144_p4 }
   0xd   :  { %p147_p7 = pnand %p146_p6, %p140_p3 }
   0xf   :  { %150 = shalt.err (!%p147_p7)
}
  0x10   :  { %s178_s16 = smov 64   ;;  %s179_s17 = smov 4  }
  0x11   :  { %19 = dma.hbm_to_vmem [thread:$0]  %s227_s0, 128, %s14_s7, [#allocation3], %s178_s16, %s178_s16, %s179_s17  }
  0x12   :  { %173 = dma.done.wait [#allocation3], 128  }
  0x13   :  { %174 = vsyncadd [#allocation3], 4294967168  ;;  %v24_v0 = vlaneseq  ;;  %v74_v7 = vld [vmem:[#allocation2] sm:$0xf]  ;;  %v75_v8 = vld [vmem:[#allocation2 + $0x4] sm:$0x5] }
  0x14   :  { %v76_v10 = vunpack.c.0.s8 %v74_v7  ;;  %v77_v11 = vunpack.c.1.s8 %v74_v7  ;;  %v78_v12 = vunpack.c.0.s8 %v75_v8  ;;  %v79_v13 = vunpack.c.1.s8 %v75_v8  ;;  %s182_s0 = smov [#allocation5]  }
  0x15   :  { %v25_v1 = vshrl.u32 %v24_v0, 7  ;;  %v180_v29 = vmov 0.017429193   ;;  %v181_v31 = vmov -1.8044444   ;;  %s105_s20 = sshll.u32 %s182_s0, 4  ;;  %s106_s20 = int_to_ptr.vmem [resolvable:$true] %s105_s20 }
  0x16   :  { %v80_v16 = vand.u32 255, %v76_v10  ;;  %v81_v17 = vand.u32 255, %v77_v11  ;;  %v82_v20 = vand.u32 255, %v78_v12  ;;  %v83_v21 = vand.u32 255, %v79_v13  ;;  %s151_s21 = scalar_lea.vmem %s106_s20, 512  ;;  %p156_p9 = scmp.lt.s32.totalorder %s106_s20, %s106_s20 }
  0x17   :  { %v207_v2 = vmul.u32.u64.low 2863311531, %v25_v1  ;;  %v208_v3 = vmul.u32.u64.high 2863311531, %v25_v1, %v207_v2  ;;  %v26_v4 = vadd.s32 8, %v25_v1  ;;  %p152_p8 = scmp.ne.s32.totalorder %s106_s20, %s151_s21  ;;  %p157_p10 = scmp.lt.s32.totalorder %s151_s21, %s151_s21 }
  0x18   :  { %v84_v24 = vcvt.s32.f32 %v80_v16  ;;  %v85_v25 = vcvt.s32.f32 %v81_v17  ;;  %v86_v28 = vcvt.s32.f32 %v82_v20  ;;  %v87_v34 = vcvt.s32.f32 %v83_v21 }
  0x19   :  { %v210_v5 = vmul.u32.u64.low 2863311531, %v26_v4  ;;  %v211_v6 = vmul.u32.u64.high 2863311531, %v26_v4, %v210_v5  ;;  %v36_v9 = vshrl.u32 %v208_v3, 1  ;;  %p158_p11 = por %p157_p10, %p156_p9 }
  0x1b   :  { %v37_v14 = vmul.u32 3, %v36_v9  ;;  %v47_v15 = vshrl.u32 %v211_v6, 1  ;;  %p159_p12 = pnand %p158_p11, %p152_p8 }
  0x1d   :  { %v38_v18 = vsub.s32 %v25_v1, %v37_v14  ;;  %v48_v19 = vmul.u32 3, %v47_v15 }
  0x1f   :  { %vm52_vm0 = vcmp.ne.s32.totalorder %v38_v18, 0  ;;  %vm54_vm1 = vcmp.lt.s32.totalorder %v38_v18, 0  ;;  %v58_v22 = vadd.s32 3, %v38_v18  ;;  %v49_v23 = vsub.s32 %v26_v4, %v48_v19 }
  0x20   :  { %vm56_vm2 = vmand %vm54_vm1, %vm52_vm0 }
  0x21   :  { %v60_v26 = vsel %vm56_vm2, %v58_v22, %v38_v18  ;;  %vm53_vm3 = vcmp.ne.s32.totalorder %v49_v23, 0  ;;  %vm55_vm4 = vcmp.lt.s32.totalorder %v49_v23, 0  ;;  %v59_v27 = vadd.s32 3, %v49_v23 }
  0x22   :  { %vm62_vm5 = vcmp.eq.s32.totalorder %v60_v26, 0  ;;  %vm68_vm6 = vcmp.eq.s32.totalorder %v60_v26, 1  ;;  %vm57_vm7 = vmand %vm55_vm4, %vm53_vm3 }
  0x23   :  { %v64_v30 = vsel %vm62_vm5, 0.017124753, %v180_v29  ;;  %v66_v32 = vsel %vm62_vm5, -2.117904, %v181_v31  ;;  %v61_v33 = vsel %vm57_vm7, %v59_v27, %v49_v23 }
  0x24   :  { %v70_v35 = vsel %vm68_vm6, 0.017507004, %v64_v30  ;;  %v72_v36 = vsel %vm68_vm6, -2.0357144, %v66_v32  ;;  %vm63_vm8 = vcmp.eq.s32.totalorder %v61_v33, 0  ;;  %vm69_vm9 = vcmp.eq.s32.totalorder %v61_v33, 1 }
  0x25   :  { %v88_v37 = vmul.f32 %v84_v24, %v70_v35  ;;  %v89_v38 = vmul.f32 %v85_v25, %v70_v35  ;;  %v65_v39 = vsel %vm63_vm8, 0.017124753, %v180_v29  ;;  %v67_v40 = vsel %vm63_vm8, -2.117904, %v181_v31 }
  0x26   :  { %v71_v41 = vsel %vm69_vm9, 0.017507004, %v65_v39  ;;  %v73_v42 = vsel %vm69_vm9, -2.0357144, %v67_v40 }
  0x27   :  { %v92_v43 = vadd.f32 %v88_v37, %v72_v36  ;;  %v93_v44 = vadd.f32 %v89_v38, %v72_v36  ;;  %v90_v45 = vmul.f32 %v86_v28, %v71_v41  ;;  %v91_v46 = vmul.f32 %v87_v34, %v71_v41 }
  0x29   :  { %96 = vst [vmem:[#allocation5] sm:$0xff] %v92_v43  ;;  %97 = vst [vmem:[#allocation5 + $0x8] sm:$0xff] %v93_v44  ;;  %v94_v47 = vadd.f32 %v90_v45, %v73_v42  ;;  %v95_v48 = vadd.f32 %v91_v46, %v73_v42 }
  0x2b   :  { %98 = vst [vmem:[#allocation5 + $0x10] sm:$0xf] %v94_v47  ;;  %99 = vst [vmem:[#allocation5 + $0x18] sm:$0xf] %v95_v48 }
  0x2c   :  { %162 = shalt.err (!%p159_p12)
}
  0x2d   :  { %s163_s24 = scalar_lea.hbm %s228_s1, 512 }
  0x2e   :  { %p164_p13 = scmp.ne.s32.totalorder %s228_s1, %s163_s24  ;;  %p167_p0 = scmp.lt.u32.totalorder %s163_s24, %s228_s1 }
  0x30   :  { %p169_p1 = pnand %p167_p0, %p164_p13 }
  0x32   :  { %172 = shalt.err (!%p169_p1)
}
  0x33   :  { %s183_s29 = smov 256   ;;  %s184_s30 = smov 16  }
  0x34   :  { %111 = dma.vmem_to_hbm [thread:$0]  %s106_s20, 512, %s228_s1, [#allocation4], %s183_s29, %s183_s29, %s184_s30  }
  0x35   :  { %175 = dma.done.wait [#allocation4], 512  }
  0x36   :  { %176 = vsyncadd [#allocation4], 4294966784 }
  0x37   :  { %115 = vsyncpa [#allocation3], 1 }
  0x38   :  { %116 = vsyncpa [#allocation4], 1 }

</bundles_post_ra>
